<compile_context>
chip_gen: v7x
topology: tpu7x:2x2x1
jax: 0.10.0
libtpu: 0.0.40
codegen_flags: <defaults>
</compile_context>

<pallas_src>
import jax
import jax.numpy as jnp
from jax.experimental import pallas as pl
from jax.experimental.pallas import tpu as pltpu


def _round_up(x: int, m: int) -> int:
    return (x + m - 1) // m * m


def _ffn_kernel(x_ref, w1_ref, b1_ref, w2_ref, b2_ref, o_ref, h_ref, acc_ref):
    # x_ref:  (tile_m, Dp) input dtype      w1_ref: (Dp, tile_f) bf16
    # b1_ref: (1, tile_f) f32               w2_ref: (tile_f, Dp) bf16
    # b2_ref: (1, Dp) f32                   o_ref:  (tile_m, Dp) out dtype
    # h_ref:  (tile_m, tile_f) bf16 scratch acc_ref: (tile_m, Dp) f32 scratch
    k = pl.program_id(1)

    @pl.when(k == 0)
    def _init():
        acc_ref[...] = jnp.zeros_like(acc_ref)

    # In-kernel cast to the MXU compute dtype (saves a wrapper HBM pass over x).
    xb = x_ref[...].astype(w1_ref.dtype)

    # First matmul on the MXU with f32 accumulation; bias + ReLU in f32 (VPU).
    h = jnp.dot(xb, w1_ref[...], preferred_element_type=jnp.float32)
    h = jnp.maximum(h + b1_ref[...], 0.0)

    # dropout == identity (inference / eval mode)
    # Stage ReLU output through an explicit bf16 VMEM scratch for the second matmul.
    h_ref[...] = h.astype(h_ref.dtype)

    # Second matmul, accumulated in f32 across d_ff chunks.
    acc_ref[...] += jnp.dot(h_ref[...], w2_ref[...],
                            preferred_element_type=jnp.float32)

    @pl.when(k == pl.num_programs(1) - 1)
    def _store():
        o_ref[...] = (acc_ref[...] + b2_ref[...]).astype(o_ref.dtype)


def positionwise_feed_forward(
    x, w1, b1, w2, b2,
    *,
    compute_dtype=jnp.bfloat16,
    out_dtype=None,
    training: bool = False,
    tile_m: int | None = None,
    vmem_limit_bytes: int | None = None,
):
    """Position-wise FFN: relu(x @ w1 + b1) @ w2 + b2  (dropout = identity).

    x:  (batch, seq_len, d_model)
    w1: (d_model, d_ff)   b1: (d_ff,)     (PyTorch weight.T layout)
    w2: (d_ff, d_model)   b2: (d_model,)
    """
    if training:
        # TODO(synk): stochastic dropout path not implemented (eval-mode semantics only).
        raise NotImplementedError("training-mode dropout is not implemented; use eval semantics")

    B, S, D = x.shape
    d_ff = w1.shape[1]
    M = B * S
    out_dtype = x.dtype if out_dtype is None else out_dtype

    # ---- per-generation tuning -------------------------------------------------
    try:
        vmem_cap = int(getattr(pltpu.get_tpu_info(), "vmem_capacity_bytes", 0)) or (64 << 20)
    except Exception:  # pragma: no cover - conservative fallback
        vmem_cap = 64 << 20
    big_vmem = vmem_cap >= (128 << 20)          # v5e / v6e
    if vmem_limit_bytes is None:
        vmem_limit_bytes = (96 << 20) if big_vmem else (48 << 20)
    if tile_m is None:
        tile_m = 512 if big_vmem else 256

    # ---- feature padding (lane-dense) -------------------------------------------
    Dp = _round_up(D, 128)
    Fp = _round_up(d_ff, 128)

    # ---- d_ff reduction split so weight chunks fit VMEM for any d_ff ------------
    weight_budget = vmem_limit_bytes // 2

    def _weight_bytes(kt):
        bufs = 1 if kt == 1 else 2           # single-buffered when resident
        return 2 * Dp * (Fp // kt) * 2 * bufs

    k_tiles = 1
    while _weight_bytes(k_tiles) > weight_budget and (Fp // (2 * k_tiles)) % 128 == 0:
        k_tiles *= 2
    tile_f = Fp // k_tiles

    x_itemsize = jnp.dtype(x.dtype).itemsize
    out_itemsize = jnp.dtype(out_dtype).itemsize

    def _vmem_estimate(tm):
        w_bufs = 1 if k_tiles == 1 else 2
        return (tm * Dp * x_itemsize * 2            # x tile, double-buffered
                + tm * Dp * out_itemsize * 2        # out tile, double-buffered
                + 2 * Dp * tile_f * 2 * w_bufs      # W1 + W2 chunks (bf16)
                + (tile_f + Dp) * 4 * 2             # biases (f32)
                + tm * tile_f * 2                   # ReLU staging scratch (bf16)
                + tm * Dp * 4)                      # f32 accumulator scratch

    while tile_m > 64 and _vmem_estimate(tile_m) > int(0.85 * vmem_limit_bytes):
        tile_m //= 2

    # ---- balanced row tiles; >=2 grid steps when M > 8 (v7x dual-TC sharding) ---
    num_row_tiles = max(pl.cdiv(M, tile_m), 2 if M > 8 else 1)
    tile_m = _round_up(pl.cdiv(M, num_row_tiles), 8)
    num_row_tiles = pl.cdiv(M, tile_m)

    # ---- operands ----------------------------------------------------------------
    # Weights/biases: pad+cast once (small next to activation traffic; in a real
    # model these would be pre-padded/pre-cast outside the hot path).
    w1p = jnp.pad(w1, ((0, Dp - D), (0, Fp - d_ff))).astype(compute_dtype)
    w2p = jnp.pad(w2, ((0, Fp - d_ff), (0, Dp - D))).astype(compute_dtype)
    b1p = jnp.pad(b1, (0, Fp - d_ff)).reshape(1, Fp).astype(jnp.float32)
    b2p = jnp.pad(b2, (0, Dp - D)).reshape(1, Dp).astype(jnp.float32)

    x2d = x.reshape(M, D)
    if Dp != D:
        # Zero feature-padding is required for matmul correctness.
        x2d = jnp.pad(x2d, ((0, 0), (0, Dp - D)))
    # Rows are never padded: partial edge blocks are masked on store.

    # ---- BlockSpecs ----------------------------------------------------------------
    single = pl.Buffered(1)
    if k_tiles == 1:
        # Resident weights (constant index_map): single-buffer to halve their VMEM.
        w1_spec = pl.BlockSpec((Dp, tile_f), lambda i, k: (0, k), pipeline_mode=single)
        b1_spec = pl.BlockSpec((1, tile_f), lambda i, k: (0, k), pipeline_mode=single)
        w2_spec = pl.BlockSpec((tile_f, Dp), lambda i, k: (k, 0), pipeline_mode=single)
    else:
        # Chunked weights: keep default double-buffering to hide the per-k DMA.
        w1_spec = pl.BlockSpec((Dp, tile_f), lambda i, k: (0, k))
        b1_spec = pl.BlockSpec((1, tile_f), lambda i, k: (0, k))
        w2_spec = pl.BlockSpec((tile_f, Dp), lambda i, k: (k, 0))
    b2_spec = pl.BlockSpec((1, Dp), lambda i, k: (0, 0), pipeline_mode=single)

    cost = pl.CostEstimate(
        flops=4 * M * Dp * Fp,                       # two matmuls
        transcendentals=0,
        bytes_accessed=(M * Dp * x_itemsize + M * Dp * out_itemsize
                        + 2 * Dp * Fp * 2 + (Fp + Dp) * 4),
    )

    out2d = pl.pallas_call(
        _ffn_kernel,
        out_shape=jax.ShapeDtypeStruct((M, Dp), out_dtype),
        grid_spec=pltpu.PrefetchScalarGridSpec(
            num_scalar_prefetch=0,
            grid=(num_row_tiles, k_tiles),
            in_specs=[
                pl.BlockSpec((tile_m, Dp), lambda i, k: (i, 0)),   # x row tile
                w1_spec, b1_spec, w2_spec, b2_spec,
            ],
            out_specs=pl.BlockSpec((tile_m, Dp), lambda i, k: (i, 0)),
            scratch_shapes=[
                pltpu.VMEM((tile_m, tile_f), compute_dtype),       # ReLU staging (bf16)
                pltpu.VMEM((tile_m, Dp), jnp.float32),             # f32 accumulator
            ],
        ),
        compiler_params=pltpu.CompilerParams(
            dimension_semantics=("parallel", "arbitrary"),
            vmem_limit_bytes=vmem_limit_bytes,
        ),
        cost_estimate=cost,
    )(x2d, w1p, b1p, w2p, b2p)

    if Dp != D:
        out2d = out2d[:, :D]
    return out2d.reshape(B, S, D)


def _reference_f32(x, w1, b1, w2, b2):
    h = jnp.maximum(x @ w1 + b1, 0.0)
    return h @ w2 + b2


if __name__ == "__main__":
    # Small shapes consistent with the module's forward:
    # (batch_size, seq_len, d_model) with d_ff hidden width.
    batch, seq_len, d_model, d_ff = 2, 8, 32, 64

    key = jax.random.PRNGKey(0)
    kx, kw1, kb1, kw2, kb2 = jax.random.split(key, 5)

    x = jax.random.normal(kx, (batch, seq_len, d_model), dtype=jnp.float32)
    # Parameters (deterministic init). Stored as (in, out) == PyTorch weight.T
    w1 = jax.random.normal(kw1, (d_model, d_ff), dtype=jnp.float32) * 0.1
    b1 = jax.random.normal(kb1, (d_ff,), dtype=jnp.float32) * 0.1
    w2 = jax.random.normal(kw2, (d_ff, d_model), dtype=jnp.float32) * 0.1
    b2 = jax.random.normal(kb2, (d_model,), dtype=jnp.float32) * 0.1

    out = positionwise_feed_forward(x, w1, b1, w2, b2)
    out = jax.block_until_ready(out)

    ref = _reference_f32(x, w1, b1, w2, b2)
    assert out.shape == (batch, seq_len, d_model)
    # bf16 MXU operands with f32 accumulation => loose tolerance vs the f32 reference.
    assert jnp.allclose(out, ref, atol=5e-2, rtol=5e-2), "mismatch vs reference"

    print("KERNEL_OK")
</pallas_src>

<mosaic_0001>
module attributes {stable_mosaic.version = 11 : i64} {
  func.func @_ffn_kernel(%arg0: i32, %arg1: i32, %arg2: memref<8x128xf32, #tpu.memory_space<vmem>>, %arg3: memref<128x128xbf16, #tpu.memory_space<vmem>>, %arg4: memref<1x128xf32, #tpu.memory_space<vmem>>, %arg5: memref<128x128xbf16, #tpu.memory_space<vmem>>, %arg6: memref<1x128xf32, #tpu.memory_space<vmem>>, %arg7: memref<8x128xf32, #tpu.memory_space<vmem>>, %arg8: memref<8x128xbf16, #tpu.memory_space<vmem>>, %arg9: memref<8x128xf32, #tpu.memory_space<vmem>>) attributes {dimension_semantics = [#tpu.dimension_semantics<parallel>, #tpu.dimension_semantics<arbitrary>], iteration_bounds = array<i64: 2, 1>, scalar_prefetch = 0 : i64, scratch_operands = 2 : i64, tpu.core_type = #tpu.core_type<tc>, window_params = [{transform_indices = @transform_0, window_bounds = array<i64: 8, 128>}, {pipeline_mode = #tpu.pipeline_mode<synchronous>, transform_indices = @transform_1, window_bounds = array<i64: 128, 128>}, {pipeline_mode = #tpu.pipeline_mode<synchronous>, transform_indices = @transform_2, window_bounds = array<i64: 1, 128>}, {pipeline_mode = #tpu.pipeline_mode<synchronous>, transform_indices = @transform_3, window_bounds = array<i64: 128, 128>}, {pipeline_mode = #tpu.pipeline_mode<synchronous>, transform_indices = @transform_4, window_bounds = array<i64: 1, 128>}, {transform_indices = @transform_5, window_bounds = array<i64: 8, 128>}]} {
    %c0_i32 = arith.constant 0 : i32
    %0 = arith.cmpi eq, %arg1, %c0_i32 : i32
    %1 = arith.extui %0 : i1 to i32
    %c0_i32_0 = arith.constant 0 : i32
    %2 = arith.cmpi ne, %1, %c0_i32_0 : i32
    scf.if %2 {
      %cst_20 = arith.constant 0.000000e+00 : f32
      %23 = vector.broadcast %cst_20 : f32 to vector<8x128xf32>
      %c0_21 = arith.constant 0 : index
      %c0_22 = arith.constant 0 : index
      %24 = vector.load %arg9[%c0_21, %c0_22] : memref<8x128xf32, #tpu.memory_space<vmem>>, vector<8x128xf32>
      tpu.vector_store %arg9[%c0_21, %c0_22], %23 {strides = array<i32>} : memref<8x128xf32, #tpu.memory_space<vmem>>, vector<8x128xf32>,
    } else {
    }
    %c0 = arith.constant 0 : index
    %c0_1 = arith.constant 0 : index
    %3 = vector.load %arg2[%c0, %c0_1] : memref<8x128xf32, #tpu.memory_space<vmem>>, vector<8x128xf32>
    %4 = arith.truncf %3 : vector<8x128xf32> to vector<8x128xbf16>
    %c0_2 = arith.constant 0 : index
    %c0_3 = arith.constant 0 : index
    %5 = vector.load %arg3[%c0_2, %c0_3] : memref<128x128xbf16, #tpu.memory_space<vmem>>, vector<128x128xbf16>
    %cst = arith.constant dense<0.000000e+00> : vector<8x128xf32>
    %6 = tpu.matmul %4, %5, %cst {dimension_numbers = #tpu.dot_dimension_numbers<[1], [0], [0], [1], [0, 0, 1, 1], [], []>} : vector<8x128xbf16>, vector<128x128xbf16>, vector<8x128xf32> -> vector<8x128xf32>
    %c0_4 = arith.constant 0 : index
    %c0_5 = arith.constant 0 : index
    %7 = vector.load %arg4[%c0_4, %c0_5] : memref<1x128xf32, #tpu.memory_space<vmem>>, vector<1x128xf32>
    %8 = vector.broadcast %7 : vector<1x128xf32> to vector<8x128xf32>
    %9 = arith.addf %6, %8 : vector<8x128xf32>
    %cst_6 = arith.constant 0.000000e+00 : f32
    %10 = vector.broadcast %cst_6 : f32 to vector<8x128xf32>
    %11 = arith.maximumf %9, %10 : vector<8x128xf32>
    %12 = arith.truncf %11 : vector<8x128xf32> to vector<8x128xbf16>
    %c0_7 = arith.constant 0 : index
    %c0_8 = arith.constant 0 : index
    %13 = vector.load %arg8[%c0_7, %c0_8] : memref<8x128xbf16, #tpu.memory_space<vmem>>, vector<8x128xbf16>
    tpu.vector_store %arg8[%c0_7, %c0_8], %12 {strides = array<i32>} : memref<8x128xbf16, #tpu.memory_space<vmem>>, vector<8x128xbf16>,
    %c0_9 = arith.constant 0 : index
    %c0_10 = arith.constant 0 : index
    %14 = vector.load %arg9[%c0_9, %c0_10] : memref<8x128xf32, #tpu.memory_space<vmem>>, vector<8x128xf32>
    %c0_11 = arith.constant 0 : index
    %c0_12 = arith.constant 0 : index
    %15 = vector.load %arg8[%c0_11, %c0_12] : memref<8x128xbf16, #tpu.memory_space<vmem>>, vector<8x128xbf16>
    %c0_13 = arith.constant 0 : index
    %c0_14 = arith.constant 0 : index
    %16 = vector.load %arg5[%c0_13, %c0_14] : memref<128x128xbf16, #tpu.memory_space<vmem>>, vector<128x128xbf16>
    %cst_15 = arith.constant dense<0.000000e+00> : vector<8x128xf32>
    %17 = tpu.matmul %15, %16, %cst_15 {dimension_numbers = #tpu.dot_dimension_numbers<[1], [0], [0], [1], [0, 0, 1, 1], [], []>} : vector<8x128xbf16>, vector<128x128xbf16>, vector<8x128xf32> -> vector<8x128xf32>
    %18 = arith.addf %14, %17 : vector<8x128xf32>
    %c0_16 = arith.constant 0 : index
    %c0_17 = arith.constant 0 : index
    %19 = vector.load %arg9[%c0_16, %c0_17] : memref<8x128xf32, #tpu.memory_space<vmem>>, vector<8x128xf32>
    tpu.vector_store %arg9[%c0_16, %c0_17], %18 {strides = array<i32>} : memref<8x128xf32, #tpu.memory_space<vmem>>, vector<8x128xf32>,
    %c0_i32_18 = arith.constant 0 : i32
    %20 = arith.cmpi eq, %arg1, %c0_i32_18 : i32
    %21 = arith.extui %20 : i1 to i32
    %c0_i32_19 = arith.constant 0 : i32
    %22 = arith.cmpi ne, %21, %c0_i32_19 : i32
    scf.if %22 {
      %c0_20 = arith.constant 0 : index
      %c0_21 = arith.constant 0 : index
      %23 = vector.load %arg9[%c0_20, %c0_21] : memref<8x128xf32, #tpu.memory_space<vmem>>, vector<8x128xf32>
      %c0_22 = arith.constant 0 : index
      %c0_23 = arith.constant 0 : index
      %24 = vector.load %arg6[%c0_22, %c0_23] : memref<1x128xf32, #tpu.memory_space<vmem>>, vector<1x128xf32>
      %25 = vector.broadcast %24 : vector<1x128xf32> to vector<8x128xf32>
      %26 = arith.addf %23, %25 : vector<8x128xf32>
      %c0_24 = arith.constant 0 : index
      %c0_25 = arith.constant 0 : index
      %27 = vector.load %arg7[%c0_24, %c0_25] : memref<8x128xf32, #tpu.memory_space<vmem>>, vector<8x128xf32>
      tpu.vector_store %arg7[%c0_24, %c0_25], %26 {strides = array<i32>} : memref<8x128xf32, #tpu.memory_space<vmem>>, vector<8x128xf32>,
    } else {
    }
    return
  }
  func.func @transform_0(%arg0: i32, %arg1: i32) -> (i32, i32) {
    %c0_i32 = arith.constant 0 : i32
    %c0_i32_0 = arith.constant 0 : i32
    return %arg0, %c0_i32 : i32, i32
  }
  func.func @transform_1(%arg0: i32, %arg1: i32) -> (i32, i32) {
    %c0_i32 = arith.constant 0 : i32
    %c0_i32_0 = arith.constant 0 : i32
    return %c0_i32, %arg1 : i32, i32
  }
  func.func @transform_2(%arg0: i32, %arg1: i32) -> (i32, i32) {
    %c0_i32 = arith.constant 0 : i32
    %c0_i32_0 = arith.constant 0 : i32
    return %c0_i32, %arg1 : i32, i32
  }
  func.func @transform_3(%arg0: i32, %arg1: i32) -> (i32, i32) {
    %c0_i32 = arith.constant 0 : i32
    %c0_i32_0 = arith.constant 0 : i32
    return %arg1, %c0_i32 : i32, i32
  }
  func.func @transform_4(%arg0: i32, %arg1: i32) -> (i32, i32) {
    %c0_i32 = arith.constant 0 : i32
    %c0_i32_0 = arith.constant 0 : i32
    %c0_i32_1 = arith.constant 0 : i32
    return %c0_i32, %c0_i32_0 : i32, i32
  }
  func.func @transform_5(%arg0: i32, %arg1: i32) -> (i32, i32) {
    %c0_i32 = arith.constant 0 : i32
    %c0_i32_0 = arith.constant 0 : i32
    return %arg0, %c0_i32 : i32, i32
  }
}

</mosaic_0001>

<bundles_post_ra>
// kernel: tpu_custom_call.1
= control target key start
LH: loop header
LB: loop body
LE: loop exit
PB: predicated region body
PF: predicated region fallthrough
CT: control target
= control target key end

     0   :  { %10 = vsyncpa [#allocation5], 0  ;;  %s1353_s0 = inlined_call_operand.hbm [shape: f32[16,128], index: 0, kind: input, shape index: {}]   ;;  %s1354_s1 = inlined_call_operand.hbm [shape: bf16[128,128], index: 1, kind: input, shape index: {}]   ;;  %s1355_s2 = inlined_call_operand.vmem [shape: f32[1,128], index: 2, kind: input, shape index: {}]   ;;  %s1356_s3 = inlined_call_operand.hbm [shape: bf16[128,128], index: 3, kind: input, shape index: {}]   ;;  %s1357_s4 = inlined_call_operand.vmem [shape: f32[1,128], index: 4, kind: input, shape index: {}]   ;;  %s1358_s5 = inlined_call_operand.hbm [shape: f32[16,128], index: 5, kind: output, shape index: {}]  }
   0x1   :  { %12 = vsyncpa [#allocation5 + $0x1], 0 }
   0x2   :  { %13 = vsyncpa [#allocation8], 0 }
   0x3   :  { %14 = vsyncpa [#allocation6], 0 }
   0x4   :  { %16 = vsyncpa [#allocation6 + $0x1], 0  ;;  %s1090_s18 = smov 0   ;;  %s1092_s19 = smov 0  }
   0x5   :  { %s1094_s20 = smov 0   ;;  %s1096_s21 = smov 0  }
   0x6   :  { %s1098_s22 = smov 0   ;;  %s1100_s23 = smov 0  }
   0x7 LB: > { %s681_s24 = sadd.s32 4294967295, %s1050_s23   ;;  %s682_s25 = sadd.s32 4294967294, %s1050_s23   ;;  %s1050_s23 = sphi %s1100_s23, %s22_s23   ;;  %s1046_s22 = sphi %s1098_s22, %s1380_s22   ;;  %s1042_s21 = sphi %s1096_s21, %s1379_s21   ;;  %s1038_s20 = sphi %s1094_s20, %s1378_s20   ;;  %s1034_s19 = sphi %s1092_s19, %s1377_s19   ;;  %s1030_s18 = sphi %s1090_s18, %s1376_s18  }
   0x8   : > { %p54_p0 = scmp.ne.s32.totalorder %s1034_s19, %s1030_s18  ;;  %p1124_p1 = scmp.eq.s32.totalorder %s681_s24, 0 }
   0x9   : > { %p1128_p2 = scmp.eq.s32.totalorder %s681_s24, 1  ;;  %p183_p3 = scmp.eq.s32.totalorder %s682_s25, 1 }
   0xa   : > { %s1363_s26 = scalar_select %p1124_p1, 1, 0 }
   0xb   : > { %p1134_p4 = por %p1124_p1, %p54_p0  ;;  %p683_p5 = scmp.ge.s32.totalorder %s1050_s23, 1 }
   0xc   : > { %p1139_p6 = por %p183_p3, %p54_p0  ;;  %p190_p7 = scmp.lt.s32.totalorder %s1050_s23, 3 }
   0xd   : > { %s1365_s28 = scalar_select %p1134_p4, 1, 0 }
   0xe   : > { %s1366_s29 = scalar_select %p1139_p6, 1, 0 }
   0xf   : > { %p1144_p8 = pnand %p683_p5, %p190_p7  ;;  %s1052_s6 = smov [#allocation7]  }
  0x10   : > { %s204_s7 = sshll.u32 %s1052_s6, 4  ;;  %s1053_s9 = smov [#allocation9]   ;;  %s1148_s7 = int_to_ptr.vmem [resolvable:$true] %s204_s7 }
  0x11   : > { %p787_p9 = pneg %p1144_p8  ;;  %s226_s10 = sshll.u32 %s1053_s9, 4  ;;  %s1159_s10 = int_to_ptr.vmem [resolvable:$true] %s226_s10 }
  0x12   : > { %s878_s13 = scalar_lea.hbm %s1354_s1, 1024 }
  0x13   : > { %p1155_p11 = pnand %p787_p9, %p1124_p1  ;;  %p879_p12 = scmp.ne.s32.totalorder %s1354_s1, %s878_s13 }
  0x14   : > { %p885_p5 = scmp.lt.u32.totalorder %s878_s13, %s1354_s1 }
  0x15   : > { %p880_p13 = pneg %p1155_p11 }
  0x17   : > { %p881_p0 = pnand %p880_p13, %p879_p12 }
  0x19   : > { %p882_p3 = pneg %p881_p0 }
  0x1b   : > { %p887_p7 = pnand %p885_p5, %p882_p3 }
  0x1d   : > { %890 = shalt.err (!%p887_p7)
}
  0x1e   : > { %s891_s24 = scalar_lea.vmem %s1148_s7, 1024  ;;  %p899_p1 = scmp.lt.s32.totalorder %s1148_s7, %s1148_s7 }
  0x1f   : > { %p892_p9 = scmp.ne.s32.totalorder %s1148_s7, %s891_s24  ;;  %p900_p12 = scmp.lt.s32.totalorder %s891_s24, %s891_s24 }
  0x21   : > { %p894_p10 = pnand %p892_p9, %p880_p13  ;;  %p901_p0 = por %p900_p12, %p899_p1 }
  0x23   : > { %p895_p6 = pneg %p894_p10 }
  0x25   : > { %p902_p4 = pnand %p901_p0, %p895_p6 }
  0x27   : > { %905 = shalt.err (!%p902_p4)
}
  0x28   : > { %s1054_s25 = smov 64   ;;  %s1055_s6 = smov 4  }
  0x29   : > { %790 = dma.hbm_to_vmem [thread:$0]  (!%p1155_p11), %s1354_s1, 1024, %s1148_s7, [#allocation8], %s1054_s25, %s1054_s25, %s1055_s6  }
  0x2a   : > { %s906_s14 = scalar_lea.hbm %s1356_s3, 1024 }
  0x2b   : > { %p907_p1 = scmp.ne.s32.totalorder %s1356_s3, %s906_s14  ;;  %p913_p10 = scmp.lt.u32.totalorder %s906_s14, %s1356_s3 }
  0x2d   : > { %p909_p4 = pnand %p907_p1, %p880_p13 }
  0x2f   : > { %p910_p6 = pneg %p909_p4 }
  0x31   : > { %p915_p3 = pnand %p913_p10, %p910_p6 }
  0x33   : > { %918 = shalt.err (!%p915_p3)
}
  0x34   : > { %s919_s7 = scalar_lea.vmem %s1159_s10, 1024  ;;  %p927_p12 = scmp.lt.s32.totalorder %s1159_s10, %s1159_s10 }
  0x35   : > { %p920_p5 = scmp.ne.s32.totalorder %s1159_s10, %s919_s7  ;;  %p928_p0 = scmp.lt.s32.totalorder %s919_s7, %s919_s7 }
  0x37   : > { %p922_p7 = pnand %p920_p5, %p880_p13  ;;  %p929_p1 = por %p928_p0, %p927_p12 }
  0x39   : > { %p923_p9 = pneg %p922_p7 }
  0x3b   : > { %p930_p4 = pnand %p929_p1, %p923_p9 }
  0x3d   : > { %933 = shalt.err (!%p930_p4)
}
  0x3e   : > { %793 = dma.hbm_to_vmem [thread:$0]  (!%p1155_p11), %s1356_s3, 1024, %s1159_s10, [#allocation8], %s1054_s25, %s1054_s25, %s1055_s6  }
  0x3f   : > { %s34_s12 = sadd.s32 1, %s1046_s22  ;;  %s41_s13 = sadd.s32 1, %s1038_s20 }
  0x40   : > { %p36_p13 = scmp.ge.s32.totalorder %s34_s12, 2  ;;  %p48_p6 = scmp.ne.s32.totalorder %s1038_s20, %s1034_s19 }
  0x41   : > { %p49_p10 = scmp.eq.s32.totalorder %s1050_s23, 0  ;;  %p804_p3 = scmp.lt.s32.totalorder %s1050_s23, 2 }
  0x42   : > { %s1382_s12 = smov (%p36_p13, %s34_s12), 0  ;;  %p1223_p7 = por %p1128_p2, %p48_p6 }
  0x43   : > { %p50_p5 = por %p49_p10, %p48_p6  ;;  %s38_s14 = ssub.s32 %s1046_s22, %s1382_s12 }
  0x44   : > { %s1369_s8 = scalar_select %p1223_p7, 1, 0 }
  0x45   : > { %s243_s15 = sand.u32 1, %s1038_s20   ;;  %p39_p9 = scmp.eq.s32.totalorder %s38_s14, 0 }
  0x46   : > { %s688_s10 = sshll.u32 %s243_s15, 3  ;;  %s689_s25 = sshll.u32 %s1046_s22, 7 }
  0x47   : > { %s1232_s6 = scalar_select %p39_p9, %s1038_s20, %s41_s13  }
  0x48   : > { %s1237_s24 = scalar_lea.hbm %s1353_s0, %s689_s25  ;;  %s247_s27 = scalar_lea.vmem [#allocation4], %s688_s10 }
  0x49   : > { %s254_s7 = sshll.u32 %s247_s27, 4  ;;  %p1241_p2 = pnand %p804_p3, %p50_p5  ;;  %s1245_s7 = int_to_ptr.vmem [resolvable:$true] %s254_s7 }
  0x4a   : > { %s244_s11 = scalar_lea.sflag [#allocation5], %s243_s15  ;;  %s934_s13 = scalar_lea.hbm %s1237_s24, 128 }
  0x4b   : > { %p935_p11 = scmp.ne.s32.totalorder %s1237_s24, %s934_s13  ;;  %p936_p12 = pneg %p1241_p2 }
  0x4c   : > { %s939_s25 = scalar_lea.hbm %s1353_s0, 256  ;;  %p940_p4 = scmp.lt.u32.totalorder %s1237_s24, %s1353_s0 }
  0x4d   : > { %p937_p0 = pnand %p936_p12, %p935_p11  ;;  %p941_p13 = scmp.lt.u32.totalorder %s939_s25, %s934_s13 }
  0x4e   : > { %p943_p10 = scmp.lt.u32.totalorder %s934_s13, %s1237_s24 }
  0x4f   : > { %p938_p1 = pneg %p937_p0  ;;  %p942_p6 = por %p941_p13, %p940_p4 }
  0x51   : > { %p944_p3 = por %p943_p10, %p942_p6 }
  0x53   : > { %p945_p5 = pnand %p944_p3, %p938_p1 }
  0x55   : > { %948 = shalt.err (!%p945_p5)
}
  0x56   : > { %s949_s15 = scalar_lea.vmem %s1245_s7, 128  ;;  %s1056_s27 = smov [#allocation4]  }
  0x57   : > { %p950_p9 = scmp.ne.s32.totalorder %s1245_s7, %s949_s15  ;;  %s954_s14 = sshll.u32 %s1056_s27, 4  ;;  %s955_s14 = int_to_ptr.vmem [resolvable:$false] %s954_s14 }
  0x58   : > { %s956_s10 = scalar_lea.vmem %s955_s14, 256  ;;  %p957_p7 = scmp.lt.s32.totalorder %s1245_s7, %s955_s14 }
  0x59   : > { %p952_p11 = pnand %p950_p9, %p936_p12  ;;  %p958_p4 = scmp.lt.s32.totalorder %s956_s10, %s949_s15 }
  0x5b   : > { %p953_p0 = pneg %p952_p11  ;;  %p959_p13 = por %p958_p4, %p957_p7 }
  0x5d   : > { %p960_p6 = pnand %p959_p13, %p953_p0 }
  0x5f   : > { %963 = shalt.err (!%p960_p6)
}
  0x60   : > { %797 = dma.hbm_to_vmem [thread:$0]  (!%p1241_p2), %s1237_s24, 128, %s1245_s7, %s244_s11  }
  0x61   : > { %263 = sbr.rel (%p1144_p8) target bundleno = 596 (0x254), region = 40  ;;  %s1275_s13 = sand.u32 (!%p1144_p8), 1, %s1034_s19  }
  0x62   : > { %s691_s25 = sshll.u32 (!%p1144_p8), %s1275_s13, 3  ;;  %s266_s16 = scalar_lea.sflag (!%p1144_p8), [#allocation5], %s1275_s13 }
  0x63   : > { %s1281_s17 = scalar_lea.vmem (!%p1144_p8), [#allocation4], %s691_s25  ;;  %p1371_p7 = scmp.ne.s32.totalorder (!%p1144_p8), %s1365_s28, 0 }
  0x68   : > { %1017 = dma.done.wait (%p1371_p7), %s266_s16, 128  }
  0x69   : > { %1019 = vsyncadd (%p1371_p7), %s266_s16, 4294967168  ;;  %p1372_p2 = scmp.ne.s32.totalorder %s1363_s26, 0 }
  0x6b   : > { %1021 = dma.done.wait (%p1372_p2), [#allocation8], 2048  }
  0x6c   : > { %1023 = vsyncadd (%p1372_p2), [#allocation8], 4294965248  ;;  %v1057_v0 = vmov 0.0   ;;  %vm1058_vm0 = vmmov 0   ;;  %v862_v1 = vld [vmem:[#allocation7] sm:$0xff]   ;;  %v863_v2 = vld [vmem:[#allocation7 + $0x8] sm:$0xff]  }
  0x6d   : > { %735 = vmatprep.subr.bf16.mxu0 %v1057_v0  ;;  %751 = vmatprep.mubr.msk.bf16.mxu0 %vm1058_vm0, %v1057_v0  ;;  %v864_v3 = vld [vmem:[#allocation7 + $0x10] sm:$0xff]   ;;  %v870_v4 = vld [vmem:[#allocation9] sm:$0xff]   ;;  %v865_v5 = vld [vmem:[#allocation7 + $0x18] sm:$0xff]   ;;  %s714_s7 = sshll.u32 %s1042_s21, 7  ;;  %s306_s9 = scalar_lea.vmem [#allocation10], %s691_s25 }
  0x6e   : > { %755 = vmatprep.subr.bf16.mxu1 %v1057_v0  ;;  %771 = vmatprep.mubr.msk.bf16.mxu1 %vm1058_vm0, %v1057_v0  ;;  %v871_v6 = vld [vmem:[#allocation9 + $0x8] sm:$0xff]   ;;  %v866_v7 = vld [vmem:[#allocation7 + $0x20] sm:$0xff]   ;;  %v872_v8 = vld [vmem:[#allocation9 + $0x10] sm:$0xff]   ;;  %s568_s11 = sshll.u32 %s306_s9, 4  ;;  %s1304_s14 = scalar_lea.hbm %s1358_s5, %s714_s7  ;;  %s1306_s11 = int_to_ptr.vmem [resolvable:$true] %s568_s11 }
  0x6f   : > { %736 = vmatpush3.bf16.msra.mxu0 %v862_v1  ;;  %756 = vmatpush3.bf16.msra.mxu1 %v870_v4  ;;  %v867_v9 = vld [vmem:[#allocation7 + $0x28] sm:$0xff]   ;;  %v873_v10 = vld [vmem:[#allocation9 + $0x18] sm:$0xff]   ;;  %v868_v11 = vld [vmem:[#allocation7 + $0x30] sm:$0xff]   ;;  %s555_s21 = scalar_lea.sflag [#allocation6], %s1275_s13  ;;  %s964_s10 = scalar_lea.vmem %s1306_s11, 128 }
  0x70   : > { %737 = vmatprep.subr.bf16.mxu0 %v1057_v0  ;;  %757 = vmatprep.subr.bf16.mxu1 %v1057_v0  ;;  %v869_v12 = vld [vmem:[#allocation7 + $0x38] sm:$0xff]   ;;  %v874_v15 = vld [vmem:[#allocation9 + $0x20] sm:$0xff]   ;;  %v875_v16 = vld [vmem:[#allocation9 + $0x28] sm:$0xff]   ;;  %p965_p8 = scmp.ne.s32.totalorder %s1306_s11, %s964_s10  ;;  %p1373_p12 = scmp.ne.s32.totalorder %s1369_s8, 0 }
  0x71   : > { %v317_v13 = vld [vmem:[%s1281_s17] sm:$0xff]  ;;  %v695_v19 = vld [vmem:[%s1355_s2] ss:$0 sm:$0xff]  ;;  %s1059_s25 = smov [#allocation10]  }
  0x72   : > { %v318_v14 = vpack.c.bf16 %v317_v13, %v317_v13  ;;  %v876_v17 = vld [vmem:[#allocation9 + $0x30] sm:$0xff]   ;;  %v877_v18 = vld [vmem:[#allocation9 + $0x38] sm:$0xff]   ;;  %v712_v28 = vld [vmem:[%s1357_s4] ss:$0 sm:$0xff]  ;;  %p966_p1 = pnand %p965_p8, %p1373_p12  ;;  %s968_s16 = sshll.u32 %s1059_s25, 4  ;;  %s969_s16 = int_to_ptr.vmem [resolvable:$false] %s968_s16 }
  0x73   : > { %738 = vmatpush3.bf16.msra.mxu0 %v863_v2  ;;  %758 = vmatpush3.bf16.msra.mxu1 %v871_v6  ;;  %s970_s17 = scalar_lea.vmem %s969_s16, 256  ;;  %p971_p3 = scmp.lt.s32.totalorder %s1306_s11, %s969_s16 }
  0x74   : > { %739 = vmatprep.subr.bf16.mxu0 %v1057_v0  ;;  %759 = vmatprep.subr.bf16.mxu1 %v1057_v0  ;;  %p967_p10 = pneg %p966_p1  ;;  %p972_p5 = scmp.lt.s32.totalorder %s970_s17, %s964_s10 }
  0x76   : > { %p973_p9 = por %p972_p5, %p971_p3 }
  0x77   : > { %740 = vmatpush3.bf16.msra.mxu0 %v864_v3  ;;  %760 = vmatpush3.bf16.msra.mxu1 %v872_v8 }
  0x78   : > { %741 = vmatprep.subr.bf16.mxu0 %v1057_v0  ;;  %761 = vmatprep.subr.bf16.mxu1 %v1057_v0  ;;  %p974_p11 = pnand %p973_p9, %p967_p10 }
  0x7b   : > { %742 = vmatpush3.bf16.msra.mxu0 %v865_v5  ;;  %762 = vmatpush3.bf16.msra.mxu1 %v873_v10 }
  0x7c   : > { %743 = vmatprep.subr.bf16.mxu0 %v1057_v0  ;;  %763 = vmatprep.subr.bf16.mxu1 %v1057_v0 }
  0x7f   : > { %744 = vmatpush3.bf16.msra.mxu0 %v866_v7  ;;  %764 = vmatpush3.bf16.msra.mxu1 %v874_v15 }
  0x80   : > { %745 = vmatprep.subr.bf16.mxu0 %v1057_v0  ;;  %765 = vmatprep.subr.bf16.mxu1 %v1057_v0 }
  0x83   : > { %746 = vmatpush3.bf16.msra.mxu0 %v867_v9  ;;  %766 = vmatpush3.bf16.msra.mxu1 %v875_v16 }
  0x84   : > { %747 = vmatprep.subr.bf16.mxu0 %v1057_v0  ;;  %767 = vmatprep.subr.bf16.mxu1 %v1057_v0 }
  0x87   : > { %748 = vmatpush3.bf16.msra.mxu0 %v868_v11  ;;  %768 = vmatpush3.bf16.msra.mxu1 %v876_v17 }
  0x88   : > { %749 = vmatprep.subr.bf16.mxu0 %v1057_v0  ;;  %769 = vmatprep.subr.bf16.mxu1 %v1057_v0 }
  0x8b   : > { %750 = vmatpush3.bf16.msra.mxu0 %v869_v12  ;;  %770 = vmatpush3.bf16.msra.mxu1 %v877_v18 }
  0x8e   : > { %752 = vmatmul.mubr.bf16.vlgmr.msra.gmra.mrb[0].mxu0 %v318_v14 }
 0x161   : > { %v424_v20 = vpop.f32.mrb[0].mxu0 }
 0x162   : > { %v425_v21 = vadd.f32 %v695_v19, %v424_v20  ;;  %v753_v22 = vpop.f32.mrb[1].mxu0 }
 0x163   : > { %v427_v23 = vpop.f32.mrb[2].mxu0 }
 0x164   : > { %v430_v24 = vmax.f32 %v425_v21, 0.0  ;;  %v754_v25 = vpop.f32.mrb[3].mxu0 }
 0x166   : > { %v431_v26 = vpack.c.bf16 %v430_v24, %v430_v24 }
 0x168   : > { %432 = vst [vmem:[#allocation2] sm:$0xf] %v431_v26 }
 0x16f   : > { %v434_v27 = vld [vmem:[#allocation2] sm:$0xf] }
 0x170   : > { %772 = vmatmul.mubr.bf16.vlgmr.msra.gmra.mrb[0].mxu1 %v434_v27 }
 0x243   : > { %v533_v29 = vpop.f32.mrb[0].mxu1 }
 0x244   : > { %v552_v30 = vadd.f32 %v712_v28, %v533_v29  ;;  %v773_v31 = vpop.f32.mrb[1].mxu1 }
 0x245   : > { %v536_v32 = vpop.f32.mrb[2].mxu1 }
 0x246   : > { %553 = vst [vmem:[%s306_s9] sm:$0xff] %v552_v30  ;;  %v774_v33 = vpop.f32.mrb[3].mxu1 }
 0x247   : > { %977 = shalt.err (!%p974_p11)
}
 0x248   : > { %s978_s13 = scalar_lea.hbm %s1304_s14, 128  ;;  %s982_s30 = scalar_lea.hbm %s1358_s5, 256 }
 0x249   : > { %p979_p0 = scmp.ne.s32.totalorder %s1304_s14, %s978_s13  ;;  %p983_p6 = scmp.lt.u32.totalorder %s1304_s14, %s1358_s5 }
 0x24a   : > { %p984_p7 = scmp.lt.u32.totalorder %s982_s30, %s978_s13  ;;  %p986_p8 = scmp.lt.u32.totalorder %s978_s13, %s1304_s14 }
 0x24b   : > { %p980_p4 = pnand %p979_p0, %p1373_p12 }
 0x24c   : > { %p985_p2 = por %p984_p7, %p983_p6 }
 0x24d   : > { %p981_p13 = pneg %p980_p4 }
 0x24e   : > { %p987_p1 = por %p986_p8, %p985_p2 }
 0x250   : > { %p988_p10 = pnand %p987_p1, %p981_p13 }
 0x252   : > { %991 = shalt.err (!%p988_p10)
}
 0x253   : > { %785 = dma.vmem_to_hbm [thread:$0]  (%p1373_p12), %s1306_s11, 128, %s1304_s14, %s555_s21  }
 0x254 PF: > { %s580_s9 = sand.u32 1, %s1030_s18   ;;  %p1374_p3 = scmp.ne.s32.totalorder %s1366_s29, 0 }
 0x255   : > { %p1375_p5 = scmp.ge.s32.totalorder %s1050_s23, 2  ;;  %s581_s15 = scalar_lea.sflag [#allocation6], %s580_s9 }
 0x257   : > { %p799_p9 = pnand %p1375_p5, %p1374_p3 }
 0x259   : > { %1025 = dma.done.wait (!%p799_p9), %s581_s15, 128  }
 0x25a   : > { %1027 = vsyncadd (!%p799_p9), %s581_s15, 4294967168  ;;  %s22_s23 = sadd.s32 1, %s1050_s23   ;;  %s1376_s18 = smov %s1034_s19 }
 0x25b   : > { %p19_p11 = scmp.ge.s32.totalorder %s22_s23, 4   ;;  %s1377_s19 = smov %s1038_s20 }
 0x25c   : > { %s1378_s20 = smov %s1232_s6  ;;  %s1379_s21 = smov %s1046_s22 }
 0x25d   : > { %s1380_s22 = smov %s1382_s12  ;;  %21 = sbr.rel (!%p19_p11) target bundleno = 7 (0x7), region = 106 }
 0x264   :  { %586 = vsyncpa [#allocation5], 1 }
 0x265   :  { %588 = vsyncpa [#allocation5 + $0x1], 1 }
 0x266   :  { %589 = vsyncpa [#allocation8], 1 }
 0x267   :  { %590 = vsyncpa [#allocation6], 1 }
 0x268   :  { %592 = vsyncpa [#allocation6 + $0x1], 1 }

</bundles_post_ra>
